<compile_context>
chip_gen: v5e
topology: v5e:2x2
jax: 0.10.0
libtpu: 0.0.40
codegen_flags: <defaults>
</compile_context>

<pallas_src>
import functools

import jax
import jax.numpy as jnp
from jax.experimental import pallas as pl
from jax.experimental.pallas import tpu as pltpu


def _conv_double_kernel(xs_ref, w_ref, b_ref, o_ref, op_ref, *,
                        KH, G_pad, W_stride, P_blk):
    """One (C_out, K_pad) @ (K_pad, P_blk) matmul per grid step.

    xs_ref: (G_pad, L_flat)   kw-pre-shifted image rows, interleaved (kw, ci),
                              zero-padded from KW*C_in=18 to G_pad=24 rows.
    w_ref : (C_out, K_pad)    folded (x2) weights, col k = kh*G_pad + kw*C_in + ci
                              (zero for the padded rows).
    b_ref : (C_out, 1)        folded (x2) bias.
    o_ref : (C_out, P_blk)    lane-dense output block (cols p = oh*W_stride+ow).
    op_ref: (K_pad, P_blk)    VMEM scratch: im2col operand for this block.
    """
    j = pl.program_id(1)
    # Build the im2col operand with KH fully aligned block copies:
    # lane offset j*P_blk + kh*W_stride is a multiple of 128, sublane offset
    # kh*G_pad is a multiple of 8.  Every row of op_ref is (re)written.
    for kh in range(KH):
        off = pl.multiple_of(j * P_blk + kh * W_stride, 128)
        op_ref[kh * G_pad:(kh + 1) * G_pad, :] = xs_ref[:, pl.ds(off, P_blk)]
    # Single MXU matmul (K accumulated inside the MXU, result popped once).
    acc = jnp.dot(w_ref[...], op_ref[...], preferred_element_type=jnp.float32)
    o_ref[...] = acc + b_ref[...]


def conv2d_double(x_nchw, weight, bias, *, padding=3, p_blk_max=4096):
    """Conv2d(stride=1, padding=`padding`) followed by (x2 + x2), via Pallas.

    x_nchw:  (N, C_in, H, W)        float32
    weight:  (C_out, C_in, KH, KW)  float32  (PyTorch layout)
    bias:    (C_out,)               float32
    returns: (N, C_out, H_out, W_out) float32
    """
    f32 = jnp.float32
    N, C_in, H, W = x_nchw.shape
    C_out, _, KH, KW = weight.shape
    H_pad, W_pad = H + 2 * padding, W + 2 * padding
    H_out, W_out = H_pad - KH + 1, W_pad - KW + 1

    # Lane-aligned flattened-row stride (review item: only kw misalignments,
    # handled by wrapper pre-shift below -> zero in-kernel lane rolls).
    W_stride = pl.cdiv(W_pad, 128) * 128
    P_needed = H_out * W_stride                       # valid output columns live here
    # Split the lane axis into >=2 blocks (v7x: shards across both TCs; also
    # gives the pipeline >1 step so input DMA overlaps compute).
    P_blk = min(p_blk_max, pl.cdiv(pl.cdiv(P_needed, 2), 128) * 128)
    NPB = pl.cdiv(P_needed, P_blk)
    P_total = NPB * P_blk
    L_flat = P_total + (KH - 1) * W_stride            # covers every in-kernel slice

    G = KW * C_in                                     # 18 rows per kh group
    G_pad = pl.cdiv(G, 8) * 8                         # 24: sublane-aligned groups
    K_pad = KH * G_pad                                # 96 (real K = 72)

    # ---- wrapper-side layout plumbing (tiny) --------------------------------
    # Spatial zero-pad; right-pad width up to the lane-aligned row stride.
    x_p = jnp.pad(x_nchw.astype(f32),
                  ((0, 0), (0, 0),
                   (padding, padding),
                   (padding, padding + (W_stride - W_pad))))
    x_flat = x_p.reshape(N, C_in, H_pad * W_stride)
    x_flat = jnp.pad(x_flat, ((0, 0), (0, 0),
                              (0, L_flat + KW - 1 - H_pad * W_stride)))
    # KW pre-shifted copies, interleaved as rows (kw, ci); pad rows to G_pad
    # with zeros so the kernel's scratch stores are fully sublane-aligned.
    xs = jnp.stack([x_flat[:, :, kw:kw + L_flat] for kw in range(KW)], axis=1)
    xs = xs.reshape(N, G, L_flat)
    xs = jnp.pad(xs, ((0, 0), (0, G_pad - G), (0, 0)))

    # Fold the `x2 + x2` doubling into the constant-sized weight/bias and
    # reshape the weight to a single lane-dense (C_out, K_pad) matrix whose
    # column k = kh*G_pad + kw*C_in + ci matches the operand row ordering.
    w_r = jnp.transpose(2.0 * weight.astype(f32), (0, 2, 3, 1))   # (co,kh,kw,ci)
    w_r = w_r.reshape(C_out, KH, G)
    w2 = jnp.pad(w_r, ((0, 0), (0, 0), (0, G_pad - G))).reshape(C_out, K_pad)
    b2 = (2.0 * bias.astype(f32)).reshape(C_out, 1)
    # TODO(synk): optionally cast xs/w2 to bf16 on v6e/v7x (f32 kept for accuracy).

    kernel = functools.partial(_conv_double_kernel, KH=KH, G_pad=G_pad,
                               W_stride=W_stride, P_blk=P_blk)

    flops = 2 * N * P_total * C_out * K_pad
    bytes_accessed = 4 * (N * G_pad * L_flat + C_out * K_pad + C_out
                          + N * C_out * P_total)

    out_full = pl.pallas_call(
        kernel,
        out_shape=jax.ShapeDtypeStruct((N, C_out, P_total), f32),
        grid=(N, NPB),
        in_specs=[
            # Whole pre-shifted image per batch element; the block index is
            # constant across j, so it is DMAed only once per image.
            pl.BlockSpec((None, G_pad, L_flat), lambda n, j: (n, 0, 0)),
            pl.BlockSpec((C_out, K_pad), lambda n, j: (0, 0)),
            pl.BlockSpec((C_out, 1), lambda n, j: (0, 0)),
        ],
        out_specs=pl.BlockSpec((None, C_out, P_blk), lambda n, j: (n, 0, j)),
        scratch_shapes=[pltpu.VMEM((K_pad, P_blk), f32)],
        compiler_params=pltpu.CompilerParams(
            dimension_semantics=("parallel", "parallel")),
        cost_estimate=pl.CostEstimate(flops=flops, transcendentals=0,
                                      bytes_accessed=bytes_accessed),
    )(xs, w2, b2)

    # Drop padded-stride / padded-length garbage columns; the result is
    # already NCHW (free reshape + slice, no transpose).
    out = out_full[:, :, :H_out * W_stride].reshape(N, C_out, H_out, W_stride)
    return out[:, :, :, :W_out]


if __name__ == "__main__":
    key = jax.random.PRNGKey(0)
    k_x, k_w, k_b = jax.random.split(key, 3)

    # Small shapes consistent with the module: C_in=3, C_out=8, kernel (4,6), pad 3.
    N, C_in, H, W = 2, 3, 16, 24
    C_out, KH, KW = 8, 4, 6

    x = jax.random.normal(k_x, (N, C_in, H, W), dtype=jnp.float32)
    weight = jax.random.normal(k_w, (C_out, C_in, KH, KW), dtype=jnp.float32) * 0.1
    bias = jax.random.normal(k_b, (C_out,), dtype=jnp.float32) * 0.1

    out = conv2d_double(x, weight, bias, padding=3)
    out = jax.block_until_ready(out)

    # Reference: lax conv (NCHW / OIHW) + bias, doubled (x2 + x2).
    ref = jax.lax.conv_general_dilated(
        x, weight, window_strides=(1, 1), padding=((3, 3), (3, 3)),
        dimension_numbers=("NCHW", "OIHW", "NCHW"))
    ref = 2.0 * (ref + bias.reshape(1, C_out, 1, 1))

    H_out, W_out = H + 2 * 3 - KH + 1, W + 2 * 3 - KW + 1
    assert out.shape == (N, C_out, H_out, W_out), out.shape
    err = float(jnp.max(jnp.abs(out - ref)))
    assert jnp.allclose(out, ref, atol=1e-3, rtol=1e-3), err

    print("KERNEL_OK")
</pallas_src>

<mosaic_0001>
module attributes {stable_mosaic.version = 11 : i64} {
  func.func @_conv_double_kernel(%arg0: i32, %arg1: i32, %arg2: memref<1x24x2944xf32, #tpu.memory_space<vmem>>, %arg3: memref<8x96xf32, #tpu.memory_space<vmem>>, %arg4: memref<8x1xf32, #tpu.memory_space<vmem>>, %arg5: memref<1x8x1280xf32, #tpu.memory_space<vmem>>, %arg6: memref<96x1280xf32, #tpu.memory_space<vmem>>) attributes {dimension_semantics = [#tpu.dimension_semantics<parallel>, #tpu.dimension_semantics<parallel>], iteration_bounds = array<i64: 2, 2>, scalar_prefetch = 0 : i64, scratch_operands = 1 : i64, tpu.core_type = #tpu.core_type<tc>, window_params = [{transform_indices = @transform_0, window_bounds = array<i64: 1, 24, 2944>}, {pipeline_mode = #tpu.pipeline_mode<synchronous>, transform_indices = @transform_1, window_bounds = array<i64: 8, 96>}, {pipeline_mode = #tpu.pipeline_mode<synchronous>, transform_indices = @transform_2, window_bounds = array<i64: 8, 1>}, {transform_indices = @transform_3, window_bounds = array<i64: 1, 8, 1280>}]} {
    %c1280_i32 = arith.constant 1280 : i32
    %0 = arith.muli %arg1, %c1280_i32 : i32
    %c0_i32 = arith.constant 0 : i32
    %1 = arith.addi %0, %c0_i32 : i32
    %2 = tpu.assume_multiple %1, 128 : i32
    %c0 = arith.constant 0 : index
    %c0_0 = arith.constant 0 : index
    %3 = arith.index_cast %2 : i32 to index
    %4 = vector.load %arg2[%c0, %c0_0, %3] : memref<1x24x2944xf32, #tpu.memory_space<vmem>>, vector<1x24x1280xf32>
    %5 = vector.shape_cast %4 : vector<1x24x1280xf32> to vector<24x1280xf32>
    %c0_1 = arith.constant 0 : index
    %c0_2 = arith.constant 0 : index
    %6 = vector.load %arg6[%c0_1, %c0_2] : memref<96x1280xf32, #tpu.memory_space<vmem>>, vector<24x1280xf32>
    tpu.vector_store %arg6[%c0_1, %c0_2], %5 {strides = array<i32>} : memref<96x1280xf32, #tpu.memory_space<vmem>>, vector<24x1280xf32>,
    %c1280_i32_3 = arith.constant 1280 : i32
    %7 = arith.muli %arg1, %c1280_i32_3 : i32
    %c128_i32 = arith.constant 128 : i32
    %8 = arith.addi %7, %c128_i32 : i32
    %9 = tpu.assume_multiple %8, 128 : i32
    %c0_4 = arith.constant 0 : index
    %c0_5 = arith.constant 0 : index
    %10 = arith.index_cast %9 : i32 to index
    %11 = vector.load %arg2[%c0_4, %c0_5, %10] : memref<1x24x2944xf32, #tpu.memory_space<vmem>>, vector<1x24x1280xf32>
    %12 = vector.shape_cast %11 : vector<1x24x1280xf32> to vector<24x1280xf32>
    %c24 = arith.constant 24 : index
    %c0_6 = arith.constant 0 : index
    %13 = vector.load %arg6[%c24, %c0_6] : memref<96x1280xf32, #tpu.memory_space<vmem>>, vector<24x1280xf32>
    tpu.vector_store %arg6[%c24, %c0_6], %12 {strides = array<i32>} : memref<96x1280xf32, #tpu.memory_space<vmem>>, vector<24x1280xf32>,
    %c1280_i32_7 = arith.constant 1280 : i32
    %14 = arith.muli %arg1, %c1280_i32_7 : i32
    %c256_i32 = arith.constant 256 : i32
    %15 = arith.addi %14, %c256_i32 : i32
    %16 = tpu.assume_multiple %15, 128 : i32
    %c0_8 = arith.constant 0 : index
    %c0_9 = arith.constant 0 : index
    %17 = arith.index_cast %16 : i32 to index
    %18 = vector.load %arg2[%c0_8, %c0_9, %17] : memref<1x24x2944xf32, #tpu.memory_space<vmem>>, vector<1x24x1280xf32>
    %19 = vector.shape_cast %18 : vector<1x24x1280xf32> to vector<24x1280xf32>
    %c48 = arith.constant 48 : index
    %c0_10 = arith.constant 0 : index
    %20 = vector.load %arg6[%c48, %c0_10] : memref<96x1280xf32, #tpu.memory_space<vmem>>, vector<24x1280xf32>
    tpu.vector_store %arg6[%c48, %c0_10], %19 {strides = array<i32>} : memref<96x1280xf32, #tpu.memory_space<vmem>>, vector<24x1280xf32>,
    %c1280_i32_11 = arith.constant 1280 : i32
    %21 = arith.muli %arg1, %c1280_i32_11 : i32
    %c384_i32 = arith.constant 384 : i32
    %22 = arith.addi %21, %c384_i32 : i32
    %23 = tpu.assume_multiple %22, 128 : i32
    %c0_12 = arith.constant 0 : index
    %c0_13 = arith.constant 0 : index
    %24 = arith.index_cast %23 : i32 to index
    %25 = vector.load %arg2[%c0_12, %c0_13, %24] : memref<1x24x2944xf32, #tpu.memory_space<vmem>>, vector<1x24x1280xf32>
    %26 = vector.shape_cast %25 : vector<1x24x1280xf32> to vector<24x1280xf32>
    %c72 = arith.constant 72 : index
    %c0_14 = arith.constant 0 : index
    %27 = vector.load %arg6[%c72, %c0_14] : memref<96x1280xf32, #tpu.memory_space<vmem>>, vector<24x1280xf32>
    tpu.vector_store %arg6[%c72, %c0_14], %26 {strides = array<i32>} : memref<96x1280xf32, #tpu.memory_space<vmem>>, vector<24x1280xf32>,
    %c0_15 = arith.constant 0 : index
    %c0_16 = arith.constant 0 : index
    %28 = vector.load %arg3[%c0_15, %c0_16] : memref<8x96xf32, #tpu.memory_space<vmem>>, vector<8x96xf32>
    %c0_17 = arith.constant 0 : index
    %c0_18 = arith.constant 0 : index
    %29 = vector.load %arg6[%c0_17, %c0_18] : memref<96x1280xf32, #tpu.memory_space<vmem>>, vector<96x1280xf32>
    %cst = arith.constant dense<0.000000e+00> : vector<8x1280xf32>
    %30 = tpu.matmul %28, %29, %cst {dimension_numbers = #tpu.dot_dimension_numbers<[1], [0], [0], [1], [0, 0, 1, 1], [], []>} : vector<8x96xf32>, vector<96x1280xf32>, vector<8x1280xf32> -> vector<8x1280xf32>
    %c0_19 = arith.constant 0 : index
    %c0_20 = arith.constant 0 : index
    %31 = vector.load %arg4[%c0_19, %c0_20] : memref<8x1xf32, #tpu.memory_space<vmem>>, vector<8x1xf32>
    %32 = vector.broadcast %31 : vector<8x1xf32> to vector<8x1280xf32>
    %33 = arith.addf %30, %32 : vector<8x1280xf32>
    %c0_21 = arith.constant 0 : index
    %c0_22 = arith.constant 0 : index
    %c0_23 = arith.constant 0 : index
    %34 = vector.load %arg5[%c0_21, %c0_22, %c0_23] : memref<1x8x1280xf32, #tpu.memory_space<vmem>>, vector<1x8x1280xf32>
    %35 = vector.shape_cast %34 : vector<1x8x1280xf32> to vector<8x1280xf32>
    %36 = vector.shape_cast %33 : vector<8x1280xf32> to vector<1x8x1280xf32>
    tpu.vector_store %arg5[%c0_21, %c0_22, %c0_23], %36 {strides = array<i32>} : memref<1x8x1280xf32, #tpu.memory_space<vmem>>, vector<1x8x1280xf32>,
    return
  }
  func.func @transform_0(%arg0: i32, %arg1: i32) -> (i32, i32, i32) {
    %c0_i32 = arith.constant 0 : i32
    %c0_i32_0 = arith.constant 0 : i32
    %c0_i32_1 = arith.constant 0 : i32
    return %arg0, %c0_i32, %c0_i32_0 : i32, i32, i32
  }
  func.func @transform_1(%arg0: i32, %arg1: i32) -> (i32, i32) {
    %c0_i32 = arith.constant 0 : i32
    %c0_i32_0 = arith.constant 0 : i32
    %c0_i32_1 = arith.constant 0 : i32
    return %c0_i32, %c0_i32_0 : i32, i32
  }
  func.func @transform_2(%arg0: i32, %arg1: i32) -> (i32, i32) {
    %c0_i32 = arith.constant 0 : i32
    %c0_i32_0 = arith.constant 0 : i32
    %c0_i32_1 = arith.constant 0 : i32
    return %c0_i32, %c0_i32_0 : i32, i32
  }
  func.func @transform_3(%arg0: i32, %arg1: i32) -> (i32, i32, i32) {
    %c0_i32 = arith.constant 0 : i32
    %c0_i32_0 = arith.constant 0 : i32
    return %arg0, %c0_i32, %arg1 : i32, i32, i32
  }
}

</mosaic_0001>

<bundles_post_ra>
// kernel: tpu_custom_call.1
= control target key start
LH: loop header
LB: loop body
LE: loop exit
PB: predicated region body
PF: predicated region fallthrough
CT: control target
= control target key end

     0   :  { %8 = vsyncpa [#allocation4], 0  ;;  %s1581_s0 = inlined_call_operand.hbm [shape: f32[2,24,2944], index: 0, kind: input, shape index: {}]   ;;  %s1582_s1 = inlined_call_operand.vmem [shape: f32[8,96], index: 1, kind: input, shape index: {}]   ;;  %s1583_s2 = inlined_call_operand.vmem [shape: f32[8,1], index: 2, kind: input, shape index: {}]   ;;  %s1584_s3 = inlined_call_operand.hbm [shape: f32[2,8,2560], index: 3, kind: output, shape index: {}]  }
   0x1   :  { %10 = vsyncpa [#allocation4 + $0x1], 0 }
   0x2   :  { %11 = vsyncpa [#allocation5], 0 }
   0x3   :  { %13 = vsyncpa [#allocation5 + $0x1], 0  ;;  %s1229_s12 = smov 0   ;;  %s1231_s13 = smov 0  }
   0x4   :  { %s1233_s14 = smov 0   ;;  %s1235_s15 = smov 0  }
   0x5   :  { %s1237_s16 = smov 0   ;;  %s1239_s17 = smov 0  }
   0x6   :  { %s1241_s18 = smov 0   ;;  %s1243_s19 = smov 0  }
   0x7   :  { %s1245_s20 = smov 0   ;;  %s1247_s21 = smov 0  }
   0x8   :  { %s1249_s22 = smov 0  }
   0x9 LB: > { %1589 = sst [smem:[#allocation9_spill]] %s1196_s20  ;;  %s918_s23 = sadd.s32 4294967295, %s1204_s22   ;;  %s1204_s22 = sphi %s1249_s22, %s19_s22   ;;  %s1200_s21 = sphi %s1247_s21, %s1602_s21   ;;  %s1196_s20 = sphi %s1245_s20, %s1601_s20   ;;  %s1192_s19 = sphi %s1243_s19, %s1600_s19   ;;  %s1188_s18 = sphi %s1241_s18, %s1599_s18   ;;  %s1184_s17 = sphi %s1239_s17, %s1608_s17   ;;  %s1180_s16 = sphi %s1237_s16, %s1607_s16   ;;  %s1176_s15 = sphi %s1235_s15, %s1606_s15   ;;  %s1172_s14 = sphi %s1233_s14, %s1605_s14   ;;  %s1168_s13 = sphi %s1231_s13, %s1604_s13   ;;  %s1164_s12 = sphi %s1229_s12, %s1603_s12  }
   0xa   : > { %1590 = sst [smem:[#allocation10_spill]] %s1200_s21  ;;  %s919_s24 = sadd.s32 4294967294, %s1204_s22  }
   0xb   : > { %s28_s25 = sadd.s32 1, %s1196_s20  ;;  %s31_s26 = sadd.s32 1, %s1200_s21 }
   0xc   : > { %p29_p0 = scmp.ge.s32.totalorder %s28_s25, 2  ;;  %s38_s27 = sadd.s32 1, %s1184_s17 }
   0xd   : > { %p45_p1 = scmp.ne.s32.totalorder %s1184_s17, %s1180_s16  ;;  %p46_p2 = scmp.eq.s32.totalorder %s1204_s22, 0 }
   0xe   : > { %s1610_s25 = smov (%p29_p0, %s28_s25), 0  ;;  %s1612_s26 = smov (!%p29_p0, %s31_s26), %s1200_s21 }
   0xf   : > { %1591 = sst [smem:[#allocation11_spill]] %s1610_s25  ;;  %p1293_p3 = por %p46_p2, %p45_p1 }
  0x10   : > { %p51_p4 = scmp.ne.s32.totalorder %s1180_s16, %s1176_s15  ;;  %p33_p5 = scmp.ge.s32.totalorder %s1612_s26, 2 }
  0x11   : > { %p52_p6 = scmp.eq.s32.totalorder %s918_s23, 0  ;;  %s104_s29 = ssub.s32 %s1196_s20, %s1610_s25 }
  0x12   : > { %s108_s30 = sadd.s32 1, %s1172_s14  ;;  %s1614_s26 = smov (%p33_p5, %s1612_s26), 0 }
  0x13   : > { %1593 = sst [smem:[#allocation12_spill]] %s1614_s26  ;;  %p1303_p7 = por %p52_p6, %p51_p4 }
  0x14   : > { %p118_p8 = scmp.ne.s32.totalorder %s1172_s14, %s1168_s13  ;;  %s35_s5 = ssub.s32 %s1200_s21, %s1614_s26 }
  0x15   : > { %p119_p9 = scmp.eq.s32.totalorder %s918_s23, 3  ;;  %p36_p10 = scmp.eq.s32.totalorder %s35_s5, 0 }
  0x16   : > { %s105_s6 = sor.u32 %s104_s29, %s35_s5  ;;  %p124_p13 = scmp.ne.s32.totalorder %s1168_s13, %s1164_s12 }
  0x17   : > { %p106_p11 = scmp.eq.s32.totalorder %s105_s6, 0  ;;  %p1311_p12 = por %p119_p9, %p118_p8 }
  0x18   : > { %s1316_s8 = scalar_select %p36_p10, %s1184_s17, %s38_s27  }
  0x19   : > { %s1319_s9 = scalar_select %p106_p11, %s1172_s14, %s108_s30  }
  0x1a   : > { %1596 = sst [smem:[#allocation13_spill]] %s1316_s8  ;;  %p125_p0 = scmp.eq.s32.totalorder %s919_s24, 3 }
  0x1b   : > { %p958_p1 = scmp.lt.s32.totalorder %s1204_s22, 4  ;;  %s151_s11 = sand.u32 1, %s1184_s17  }
  0x1c   : > { %p1324_p2 = por %p125_p0, %p124_p13  ;;  %s941_s15 = smul.u32 552, %s151_s11 }
  0x1d   : > { %s942_s23 = smul.u32 552, %s1200_s21  ;;  %p951_p4 = pnand %p958_p1, %p1293_p3 }
  0x1e   : > { %s155_s6 = scalar_lea.vmem [#allocation3], %s941_s15  ;;  %p923_p5 = scmp.ge.s32.totalorder %s1204_s22, 1 }
  0x1f   : > { %s160_s27 = scalar_lea.hbm %s1581_s0, %s942_s23  ;;  %s163_s30 = sshll.u32 %s155_s6, 4  ;;  %s164_s30 = int_to_ptr.vmem [resolvable:$true] %s163_s30 }
  0x20   : > { %s161_s26 = sshll.u32 %s160_s27, 4  ;;  %s152_s24 = scalar_lea.sflag [#allocation4], %s151_s11  ;;  %s162_s26 = int_to_ptr.hbm [resolvable:$true] %s161_s26 }
  0x21   : > { %s1206_s25 = smov 2944   ;;  %s1207_s20 = smov 184  }
  0x22   : > { %953 = dma.hbm_to_vmem [thread:$0]  (!%p951_p4), %s162_s26, 8832, %s164_s30, %s152_s24, %s1206_s25, %s1206_s25, %s1207_s20  }
  0x23   : > { %p171_p6 = scmp.lt.s32.totalorder %s1204_s22, 5 }
  0x25   : > { %p172_p8 = pnand %p923_p5, %p171_p6 }
  0x26   : > { %s177_s28 = sand.u32 (!%p172_p8), 1, %s1180_s16  }
  0x27   : > { %175 = sbr.rel (%p172_p8) target bundleno = 255 (0xff), region = 32  ;;  %s178_s8 = scalar_lea.sflag (!%p172_p8), [#allocation4], %s177_s28 }
  0x28   : > { %s943_s21 = smul.u32 (!%p172_p8), 552, %s177_s28 }
  0x2a   : > { %s1338_s29 = scalar_lea.vmem (!%p172_p8), [#allocation3], %s943_s21 }
  0x2c   : > { %1155 = dma.done.wait (%p1303_p7), %s178_s8, 8832  }
  0x2d   : > { %1157 = vsyncadd (%p1303_p7), %s178_s8, 4294958464  ;;  %s1345_s11 = smul.u32 1280, %s1188_s18  ;;  %vm593_vm0 = vcmask 785408  }
  0x2f   : > { %s401_s20 = sadd.s32 384, %s1345_s11  ;;  %s336_s25 = sadd.s32 256, %s1345_s11 }
  0x30   : > { %s402_s26 = sshra.s32 %s401_s20, 7  ;;  %s337_s15 = sshra.s32 %s336_s25, 7 }
  0x31   : > { %s927_s23 = sshll.u32 %s402_s26, 3  ;;  %s926_s4 = sshll.u32 %s337_s15, 3 }
  0x32   : > { %s1350_s21 = scalar_lea.vmem %s1338_s29, %s927_s23 [#allocation3]  ;;  %s271_s8 = sadd.s32 128, %s1345_s11 }
  0x33   : > { %v426_v0 = vld [vmem:[%s1350_s21 + $0x170] sm:$0xff]  ;;  %v427_v1 = vld [vmem:[%s1350_s21 + $0x178] sm:$0xff]  ;;  %v417_v3 = vld [vmem:[%s1350_s21 + $0xc0] sm:$0xff]  ;;  %s1358_s5 = scalar_lea.vmem %s1338_s29, %s926_s4 [#allocation3]  ;;  %s272_s27 = sshra.s32 %s271_s8, 7 }
  0x34   : > { %v416_v2 = vld [vmem:[%s1350_s21 + $0xb8] sm:$0xff]  ;;  %601 = vmatpush.msra.mxu0 %v426_v0  ;;  %621 = vmatpush.msra.mxu1 %v427_v1  ;;  %v406_v4 = vld [vmem:[%s1350_s21] sm:$0xff]  ;;  %v407_v5 = vld [vmem:[%s1350_s21 + $0x8] sm:$0xff]  ;;  %s925_s6 = sshll.u32 %s272_s27, 3  ;;  %s207_s24 = sshra.s32 %s1345_s11, 7 }
  0x35   : > { %v361_v6 = vld [vmem:[%s1358_s5 + $0x170] sm:$0xff]  ;;  %v362_v7 = vld [vmem:[%s1358_s5 + $0x178] sm:$0xff]  ;;  %v352_v9 = vld [vmem:[%s1358_s5 + $0xc0] sm:$0xff]  ;;  %s1369_s30 = scalar_lea.vmem %s1338_s29, %s925_s6 [#allocation3]  ;;  %s924_s28 = sshll.u32 %s207_s24, 3 }
  0x36   : > { %602 = vmatpush.msra.mxu0 %v416_v2  ;;  %622 = vmatpush.msra.mxu1 %v417_v3  ;;  %v351_v8 = vld [vmem:[%s1358_s5 + $0xb8] sm:$0xff]  ;;  %v428_v10 = vld [vmem:[%s1350_s21 + $0x180] sm:$0xff]  ;;  %v429_v11 = vld [vmem:[%s1350_s21 + $0x188] sm:$0xff]  ;;  %s1385_s11 = scalar_lea.vmem %s1338_s29, %s924_s28 [#allocation3]  ;;  %s202_s15 = sand.u32 1, %s1168_s13  }
  0x37   : > { %v418_v12 = vld [vmem:[%s1350_s21 + $0xc8] sm:$0xff]  ;;  %v419_v13 = vld [vmem:[%s1350_s21 + $0xd0] sm:$0xff]  ;;  %v341_v14 = vld [vmem:[%s1358_s5] sm:$0xff]  ;;  %641 = vmatpush.msra.mxu2 %v428_v10  ;;  %661 = vmatpush.msra.mxu3 %v429_v11  ;;  %s944_s23 = smul.u32 80, %s202_s15  ;;  %s808_s28 = scalar_lea.sflag [#allocation5], %s202_s15 }
  0x38   : > { %603 = vmatpush.msra.mxu0 %v406_v4  ;;  %623 = vmatpush.msra.mxu1 %v407_v5  ;;  %v342_v15 = vld [vmem:[%s1358_s5 + $0x8] sm:$0xff]  ;;  %v408_v16 = vld [vmem:[%s1350_s21 + $0x10] sm:$0xff]  ;;  %v409_v17 = vld [vmem:[%s1350_s21 + $0x18] sm:$0xff]  ;;  %s815_s4 = smul.u32 10, %s1188_s18  ;;  %s1102_s26 = scalar_lea.hbm %s1584_s3, 320 }
  0x39   : > { %v296_v18 = vld [vmem:[%s1369_s30 + $0x170] sm:$0xff]  ;;  %v297_v19 = vld [vmem:[%s1369_s30 + $0x178] sm:$0xff]  ;;  %642 = vmatpush.msra.mxu2 %v418_v12  ;;  %662 = vmatpush.msra.mxu3 %v419_v13  ;;  %v363_v20 = vld [vmem:[%s1358_s5 + $0x180] sm:$0xff]  ;;  %s945_s8 = smul.u32 20, %s1192_s19 }
  0x3a   : > { %604 = vmatpush.msra.mxu0 %v361_v6  ;;  %624 = vmatpush.msra.mxu1 %v362_v7  ;;  %v364_v21 = vld [vmem:[%s1358_s5 + $0x188] sm:$0xff]  ;;  %v286_v22 = vld [vmem:[%s1369_s30 + $0xb8] sm:$0xff]  ;;  %v287_v23 = vld [vmem:[%s1369_s30 + $0xc0] sm:$0xff] }
  0x3b   : > { %643 = vmatpush.msra.mxu2 %v408_v16  ;;  %663 = vmatpush.msra.mxu3 %v409_v17  ;;  %v353_v24 = vld [vmem:[%s1358_s5 + $0xc8] sm:$0xff]  ;;  %v354_v25 = vld [vmem:[%s1358_s5 + $0xd0] sm:$0xff]  ;;  %v276_v26 = vld [vmem:[%s1369_s30] sm:$0xff] }
  0x3c   : > { %605 = vmatpush.msra.mxu0 %v351_v8  ;;  %625 = vmatpush.msra.mxu1 %v352_v9  ;;  %v277_v27 = vld [vmem:[%s1369_s30 + $0x8] sm:$0xff]  ;;  %v343_v28 = vld [vmem:[%s1358_s5 + $0x10] sm:$0xff]  ;;  %v344_v29 = vld [vmem:[%s1358_s5 + $0x18] sm:$0xff] }
  0x3d   : > { %644 = vmatpush.msra.mxu2 %v363_v20  ;;  %664 = vmatpush.msra.mxu3 %v364_v21  ;;  %v231_v30 = vld [vmem:[%s1385_s11 + $0x170] sm:$0xff]  ;;  %v232_v31 = vld [vmem:[%s1385_s11 + $0x178] sm:$0xff]  ;;  %v298_v32 = vld [vmem:[%s1369_s30 + $0x180] sm:$0xff] }
  0x3e   : > { %606 = vmatpush.msra.mxu0 %v341_v14  ;;  %626 = vmatpush.msra.mxu1 %v342_v15  ;;  %v299_v33 = vld [vmem:[%s1369_s30 + $0x188] sm:$0xff]  ;;  %v221_v34 = vld [vmem:[%s1385_s11 + $0xb8] sm:$0xff]  ;;  %v222_v35 = vld [vmem:[%s1385_s11 + $0xc0] sm:$0xff] }
  0x3f   : > { %645 = vmatpush.msra.mxu2 %v353_v24  ;;  %665 = vmatpush.msra.mxu3 %v354_v25  ;;  %v288_v36 = vld [vmem:[%s1369_s30 + $0xc8] sm:$0xff]  ;;  %v289_v37 = vld [vmem:[%s1369_s30 + $0xd0] sm:$0xff]  ;;  %v211_v38 = vld [vmem:[%s1385_s11] sm:$0xff] }
  0x40   : > { %607 = vmatpush.msra.mxu0 %v296_v18  ;;  %627 = vmatpush.msra.mxu1 %v297_v19  ;;  %v212_v39 = vld [vmem:[%s1385_s11 + $0x8] sm:$0xff]  ;;  %v430_v40 = vld [vmem:[%s1350_s21 + $0x190] sm:$0xff]  ;;  %v431_v41 = vld [vmem:[%s1350_s21 + $0x198] sm:$0xff] }
  0x41   : > { %646 = vmatpush.msra.mxu2 %v343_v28  ;;  %666 = vmatpush.msra.mxu3 %v344_v29  ;;  %v278_v42 = vld [vmem:[%s1369_s30 + $0x10] sm:$0xff]  ;;  %v279_v43 = vld [vmem:[%s1369_s30 + $0x18] sm:$0xff]  ;;  %v421_v45 = vld [vmem:[%s1350_s21 + $0xe0] sm:$0xff] }
  0x42   : > { %608 = vmatpush.msra.mxu0 %v286_v22  ;;  %628 = vmatpush.msra.mxu1 %v287_v23  ;;  %v420_v44 = vld [vmem:[%s1350_s21 + $0xd8] sm:$0xff]  ;;  %v233_v46 = vld [vmem:[%s1385_s11 + $0x180] sm:$0xff]  ;;  %v234_v47 = vld [vmem:[%s1385_s11 + $0x188] sm:$0xff] }
  0x43   : > { %647 = vmatpush.msra.mxu2 %v298_v32  ;;  %667 = vmatpush.msra.mxu3 %v299_v33  ;;  %v410_v48 = vld [vmem:[%s1350_s21 + $0x20] sm:$0xff]  ;;  %v411_v49 = vld [vmem:[%s1350_s21 + $0x28] sm:$0xff]  ;;  %v224_v51 = vld [vmem:[%s1385_s11 + $0xd0] sm:$0xff] }
  0x44   : > { %609 = vmatpush.msra.mxu0 %v276_v26  ;;  %629 = vmatpush.msra.mxu1 %v277_v27  ;;  %v223_v50 = vld [vmem:[%s1385_s11 + $0xc8] sm:$0xff]  ;;  %v365_v52 = vld [vmem:[%s1358_s5 + $0x190] sm:$0xff]  ;;  %v366_v53 = vld [vmem:[%s1358_s5 + $0x198] sm:$0xff] }
  0x45   : > { %648 = vmatpush.msra.mxu2 %v288_v36  ;;  %668 = vmatpush.msra.mxu3 %v289_v37  ;;  %v213_v54 = vld [vmem:[%s1385_s11 + $0x10] sm:$0xff]  ;;  %v214_v55 = vld [vmem:[%s1385_s11 + $0x18] sm:$0xff]  ;;  %v356_v57 = vld [vmem:[%s1358_s5 + $0xe0] sm:$0xff] }
  0x46   : > { %610 = vmatpush.msra.mxu0 %v231_v30  ;;  %630 = vmatpush.msra.mxu1 %v232_v31  ;;  %v355_v56 = vld [vmem:[%s1358_s5 + $0xd8] sm:$0xff]  ;;  %v432_v58 = vld [vmem:[%s1350_s21 + $0x1a0] sm:$0xff]  ;;  %v433_v59 = vld [vmem:[%s1350_s21 + $0x1a8] sm:$0xff] }
  0x47   : > { %649 = vmatpush.msra.mxu2 %v278_v42  ;;  %669 = vmatpush.msra.mxu3 %v279_v43  ;;  %v345_v60 = vld [vmem:[%s1358_s5 + $0x20] sm:$0xff]  ;;  %v346_v61 = vld [vmem:[%s1358_s5 + $0x28] sm:$0xff]  ;;  %v423_v63 = vld [vmem:[%s1350_s21 + $0xf0] sm:$0xff] }
  0x48   : > { %611 = vmatpush.msra.mxu0 %v221_v34  ;;  %631 = vmatpush.msra.mxu1 %v222_v35  ;;  %v422_v62 = vld [vmem:[%s1350_s21 + $0xe8] sm:$0xff]  ;;  %v300_v0 = vld [vmem:[%s1369_s30 + $0x190] sm:$0xff]  ;;  %v301_v1 = vld [vmem:[%s1369_s30 + $0x198] sm:$0xff] }
  0x49   : > { %650 = vmatpush.msra.mxu2 %v233_v46  ;;  %670 = vmatpush.msra.mxu3 %v234_v47  ;;  %v412_v2 = vld [vmem:[%s1350_s21 + $0x30] sm:$0xff]  ;;  %v413_v3 = vld [vmem:[%s1350_s21 + $0x38] sm:$0xff]  ;;  %v291_v5 = vld [vmem:[%s1369_s30 + $0xe0] sm:$0xff] }
  0x4a   : > { %612 = vmatpush.msra.mxu0 %v211_v38  ;;  %632 = vmatpush.msra.mxu1 %v212_v39  ;;  %v290_v4 = vld [vmem:[%s1369_s30 + $0xd8] sm:$0xff]  ;;  %v1436_v6 = vld [vmem:[%s1582_s1] sm:$0xff]  ;;  %v281_v8 = vld [vmem:[%s1369_s30 + $0x28] sm:$0xff]  ;;  %v1208_v38 = vmov 0  }
  0x4b   : > { %651 = vmatpush.msra.mxu2 %v223_v50  ;;  %671 = vmatpush.msra.mxu3 %v224_v51  ;;  %v280_v7 = vld [vmem:[%s1369_s30 + $0x20] sm:$0xff]  ;;  %v368_v10 = vld [vmem:[%s1358_s5 + $0x1a8] sm:$0xff]  ;;  %v235_v11 = vld [vmem:[%s1385_s11 + $0x190] sm:$0xff] }
  0x4c   : > { %681 = vmatpush.msrb.mxu0 %v430_v40  ;;  %701 = vmatpush.msrb.mxu1 %v431_v41  ;;  %v367_v9 = vld [vmem:[%s1358_s5 + $0x1a0] sm:$0xff]  ;;  %v236_v12 = vld [vmem:[%s1385_s11 + $0x198] sm:$0xff]  ;;  %v357_v13 = vld [vmem:[%s1358_s5 + $0xe8] sm:$0xff] }
  0x4d   : > { %652 = vmatpush.msra.mxu2 %v213_v54  ;;  %672 = vmatpush.msra.mxu3 %v214_v55  ;;  %v358_v14 = vld [vmem:[%s1358_s5 + $0xf0] sm:$0xff]  ;;  %v225_v15 = vld [vmem:[%s1385_s11 + $0xd8] sm:$0xff]  ;;  %v226_v16 = vld [vmem:[%s1385_s11 + $0xe0] sm:$0xff] }
  0x4e   : > { %682 = vmatpush.msrb.mxu0 %v420_v44  ;;  %702 = vmatpush.msrb.mxu1 %v421_v45  ;;  %v347_v17 = vld [vmem:[%s1358_s5 + $0x30] sm:$0xff]  ;;  %v348_v18 = vld [vmem:[%s1358_s5 + $0x38] sm:$0xff]  ;;  %v215_v19 = vld [vmem:[%s1385_s11 + $0x20] sm:$0xff] }
  0x4f   : > { %721 = vmatpush.msrb.mxu2 %v432_v58  ;;  %741 = vmatpush.msrb.mxu3 %v433_v59  ;;  %v216_v20 = vld [vmem:[%s1385_s11 + $0x28] sm:$0xff]  ;;  %v434_v21 = vld [vmem:[%s1350_s21 + $0x1b0] sm:$0xff]  ;;  %v435_v22 = vld [vmem:[%s1350_s21 + $0x1b8] sm:$0xff] }
  0x50   : > { %683 = vmatpush.msrb.mxu0 %v410_v48  ;;  %703 = vmatpush.msrb.mxu1 %v411_v49  ;;  %v302_v23 = vld [vmem:[%s1369_s30 + $0x1a0] sm:$0xff]  ;;  %v303_v24 = vld [vmem:[%s1369_s30 + $0x1a8] sm:$0xff]  ;;  %v424_v25 = vld [vmem:[%s1350_s21 + $0xf8] sm:$0xff] }
  0x51   : > { %722 = vmatpush.msrb.mxu2 %v422_v62  ;;  %742 = vmatpush.msrb.mxu3 %v423_v63  ;;  %v425_v26 = vld [vmem:[%s1350_s21 + $0x100] sm:$0xff]  ;;  %v292_v27 = vld [vmem:[%s1369_s30 + $0xe8] sm:$0xff]  ;;  %v293_v28 = vld [vmem:[%s1369_s30 + $0xf0] sm:$0xff] }
  0x52   : > { %684 = vmatpush.msrb.mxu0 %v365_v52  ;;  %704 = vmatpush.msrb.mxu1 %v366_v53  ;;  %v414_v29 = vld [vmem:[%s1350_s21 + $0x40] sm:$0xff]  ;;  %v415_v30 = vld [vmem:[%s1350_s21 + $0x48] sm:$0xff]  ;;  %v369_v31 = vld [vmem:[%s1358_s5 + $0x1b0] sm:$0xff]  ;;  %s1514_s21 = scalar_lea.vmem [#allocation6], %s944_s23 }
  0x53   : > { %723 = vmatpush.msrb.mxu2 %v412_v2  ;;  %743 = vmatpush.msrb.mxu3 %v413_v3  ;;  %v370_v32 = vld [vmem:[%s1358_s5 + $0x1b8] sm:$0xff]  ;;  %v282_v33 = vld [vmem:[%s1369_s30 + $0x30] sm:$0xff]  ;;  %v360_v35 = vld [vmem:[%s1358_s5 + $0x100] sm:$0xff]  ;;  %s823_s19 = sshll.u32 %s1514_s21, 4  ;;  %s824_s19 = int_to_ptr.vmem [resolvable:$true] %s823_s19 }
  0x54   : > { %685 = vmatpush.msrb.mxu0 %v355_v56  ;;  %705 = vmatpush.msrb.mxu1 %v356_v57  ;;  %v359_v34 = vld [vmem:[%s1358_s5 + $0xf8] sm:$0xff]  ;;  %v587_v37 = vld [vmem:[%s1583_s2] sm:$0xff]  ;;  %v350_v40 = vld [vmem:[%s1358_s5 + $0x48] sm:$0xff] }
  0x55   : > { %928 = vmatmul.msk.f32.vlgmr.msra.gmra.mxu0 %vm593_vm0, %v1436_v6  ;;  %929 = vmatmul.msk.f32.vlgmr.msra.gmra.mxu1 %vm593_vm0, %v1436_v6  ;;  %v283_v36 = vld [vmem:[%s1369_s30 + $0x38] sm:$0xff]  ;;  %v349_v39 = vld [vmem:[%s1358_s5 + $0x40] sm:$0xff]  ;;  %v238_v42 = vld [vmem:[%s1385_s11 + $0x1a8] sm:$0xff]  ;;  %s819_s5 = sadd.s32 %s945_s8, %s815_s4 }
  0x56   : > { %686 = vmatpush.msrb.mxu0 %v345_v60  ;;  %706 = vmatpush.msrb.mxu1 %v346_v61  ;;  %v237_v41 = vld [vmem:[%s1385_s11 + $0x1a0] sm:$0xff]  ;;  %v304_v43 = vld [vmem:[%s1369_s30 + $0x1b0] sm:$0xff]  ;;  %v305_v44 = vld [vmem:[%s1369_s30 + $0x1b8] sm:$0xff]  ;;  %s938_s27 = sshll.u32 %s819_s5, 3 }
  0x57   : > { %724 = vmatpush.msrb.mxu2 %v367_v9  ;;  %744 = vmatpush.msrb.mxu3 %v368_v10  ;;  %v227_v45 = vld [vmem:[%s1385_s11 + $0xe8] sm:$0xff]  ;;  %v228_v46 = vld [vmem:[%s1385_s11 + $0xf0] sm:$0xff]  ;;  %v294_v47 = vld [vmem:[%s1369_s30 + $0xf8] sm:$0xff]  ;;  %s821_s18 = scalar_lea.hbm %s1584_s3, %s938_s27 }
  0x58   : > { %687 = vmatpush.msrb.mxu0 %v300_v0  ;;  %707 = vmatpush.msrb.mxu1 %v301_v1  ;;  %v295_v48 = vld [vmem:[%s1369_s30 + $0x100] sm:$0xff]  ;;  %v217_v49 = vld [vmem:[%s1385_s11 + $0x30] sm:$0xff]  ;;  %v218_v50 = vld [vmem:[%s1385_s11 + $0x38] sm:$0xff]  ;;  %s825_s24 = sshll.u32 %s821_s18, 4  ;;  %s826_s24 = int_to_ptr.hbm [resolvable:$true] %s825_s24 }
  0x59   : > { %725 = vmatpush.msrb.mxu2 %v357_v13  ;;  %745 = vmatpush.msrb.mxu3 %v358_v14  ;;  %v284_v51 = vld [vmem:[%s1369_s30 + $0x40] sm:$0xff]  ;;  %v285_v52 = vld [vmem:[%s1369_s30 + $0x48] sm:$0xff]  ;;  %v239_v53 = vld [vmem:[%s1385_s11 + $0x1b0] sm:$0xff] }
  0x5a   : > { %688 = vmatpush.msrb.mxu0 %v290_v4  ;;  %708 = vmatpush.msrb.mxu1 %v291_v5  ;;  %v240_v54 = vld [vmem:[%s1385_s11 + $0x1b8] sm:$0xff]  ;;  %v230_v56 = vld [vmem:[%s1385_s11 + $0x100] sm:$0xff]  ;;  %v220_v58 = vld [vmem:[%s1385_s11 + $0x48] sm:$0xff] }
  0x5b   : > { %726 = vmatpush.msrb.mxu2 %v347_v17  ;;  %746 = vmatpush.msrb.mxu3 %v348_v18  ;;  %v229_v55 = vld [vmem:[%s1385_s11 + $0xf8] sm:$0xff]  ;;  %v219_v57 = vld [vmem:[%s1385_s11 + $0x40] sm:$0xff]  ;;  %s1096_s11 = sshra.s32 %s826_s24, 4  ;;  %s1097_s11 = int_to_ptr.hbm [resolvable:$true] %s1096_s11 }
  0x5c   : > { %689 = vmatpush.msrb.mxu0 %v280_v7  ;;  %709 = vmatpush.msrb.mxu1 %v281_v8  ;;  %s1098_s29 = scalar_lea.hbm %s1097_s11, 80  ;;  %p1103_p10 = scmp.lt.s32.totalorder %s1097_s11, %s1584_s3 }
  0x5d   : > { %727 = vmatpush.msrb.mxu2 %v302_v23  ;;  %747 = vmatpush.msrb.mxu3 %v303_v24  ;;  %p1099_p3 = scmp.ne.s32.totalorder %s1097_s11, %s1098_s29  ;;  %p1104_p11 = scmp.lt.s32.totalorder %s1102_s26, %s1098_s29 }
  0x5e   : > { %690 = vmatpush.msrb.mxu0 %v235_v11  ;;  %710 = vmatpush.msrb.mxu1 %v236_v12 }
  0x5f   : > { %728 = vmatpush.msrb.mxu2 %v292_v27  ;;  %748 = vmatpush.msrb.mxu3 %v293_v28  ;;  %p1100_p7 = pnand %p1099_p3, %p1311_p12  ;;  %p1105_p13 = por %p1104_p11, %p1103_p10 }
  0x60   : > { %691 = vmatpush.msrb.mxu0 %v225_v15  ;;  %711 = vmatpush.msrb.mxu1 %v226_v16 }
  0x61   : > { %930 = vmatmul.msk.f32.vlgmr.msra.gmra.mxu2 %vm593_vm0, %v1436_v6  ;;  %931 = vmatmul.msk.f32.vlgmr.msra.gmra.mxu3 %vm593_vm0, %v1436_v6  ;;  %p1101_p9 = pneg %p1100_p7 }
  0x62   : > { %692 = vmatpush.msrb.mxu0 %v215_v19  ;;  %712 = vmatpush.msrb.mxu1 %v216_v20 }
  0x63   : > { %1051 = vset.pattern.permute.xlu0 %v1208_v38  ;;  %729 = vmatpush.msrb.mxu2 %v282_v33  ;;  %p1106_p0 = pnand %p1105_p13, %p1101_p9 }
  0x64   : > { %761 = vmatpush.msra.mxu0 %v434_v21  ;;  %781 = vmatpush.msra.mxu1 %v435_v22 }
  0x65   : > { %749 = vmatpush.msrb.mxu3 %v283_v36  ;;  %590 = vperm.xlu0 %1051, %v587_v37  }
  0x66   : > { %762 = vmatpush.msra.mxu0 %v424_v25  ;;  %782 = vmatpush.msra.mxu1 %v425_v26 }
  0x67   : > { %730 = vmatpush.msrb.mxu2 %v237_v41  ;;  %750 = vmatpush.msrb.mxu3 %v238_v42 }
  0x68   : > { %763 = vmatpush.msra.mxu0 %v414_v29  ;;  %783 = vmatpush.msra.mxu1 %v415_v30 }
  0x69   : > { %731 = vmatpush.msrb.mxu2 %v227_v45  ;;  %751 = vmatpush.msrb.mxu3 %v228_v46 }
  0x6a   : > { %764 = vmatpush.msra.mxu0 %v369_v31  ;;  %784 = vmatpush.msra.mxu1 %v370_v32 }
  0x6b   : > { %932 = vmatmul.msk.f32.vlgmr.msrb.gmra.mxu0 %vm593_vm0, %v1436_v6  ;;  %933 = vmatmul.msk.f32.vlgmr.msrb.gmra.mxu1 %vm593_vm0, %v1436_v6 }
  0x6c   : > { %765 = vmatpush.msra.mxu0 %v359_v34  ;;  %785 = vmatpush.msra.mxu1 %v360_v35 }
  0x6d   : > { %732 = vmatpush.msrb.mxu2 %v217_v49  ;;  %752 = vmatpush.msrb.mxu3 %v218_v50 }
  0x6e   : > { %766 = vmatpush.msra.mxu0 %v349_v39  ;;  %786 = vmatpush.msra.mxu1 %v350_v40 }
  0x6f   : > { %934 = vmatmul.msk.f32.vlgmr.msrb.gmra.mxu2 %vm593_vm0, %v1436_v6  ;;  %935 = vmatmul.msk.f32.vlgmr.msrb.gmra.mxu3 %vm593_vm0, %v1436_v6 }
  0x70   : > { %767 = vmatpush.msra.mxu0 %v304_v43  ;;  %787 = vmatpush.msra.mxu1 %v305_v44 }
  0x72   : > { %768 = vmatpush.msra.mxu0 %v294_v47  ;;  %788 = vmatpush.msra.mxu1 %v295_v48 }
  0x74   : > { %769 = vmatpush.msra.mxu0 %v284_v51  ;;  %789 = vmatpush.msra.mxu1 %v285_v52 }
  0x76   : > { %770 = vmatpush.msra.mxu0 %v239_v53  ;;  %790 = vmatpush.msra.mxu1 %v240_v54 }
  0x78   : > { %771 = vmatpush.msra.mxu0 %v229_v55  ;;  %791 = vmatpush.msra.mxu1 %v230_v56 }
  0x7a   : > { %772 = vmatpush.msra.mxu0 %v219_v57  ;;  %792 = vmatpush.msra.mxu1 %v220_v58 }
  0x7b   : > { %936 = vmatmul.msk.f32.vlgmr.msra.gmra.mxu0 %vm593_vm0, %v1436_v6  ;;  %937 = vmatmul.msk.f32.vlgmr.msra.gmra.mxu1 %vm593_vm0, %v1436_v6 }
  0xd2   : > { %v614_v59 = vpop.f32.mrf.mxu0  ;;  %v634_v60 = vpop.f32.mrf.mxu1 }
  0xd7   : > { %v591_v61 = vpop.permute.xlu0 %590 }
  0xd8   : > { %v615_v62 = vadd.f32 %v614_v59, %v591_v61  ;;  %v635_v63 = vadd.f32 %v634_v60, %v591_v61 }
  0xda   : > { %797 = vst [vmem:[%s1514_s21] sm:$0xff] %v615_v62 }
  0xdb   : > { %798 = vst [vmem:[%s1514_s21 + $0x8] sm:$0xff] %v635_v63 }
  0xe4   : > { %v654_v0 = vpop.f32.mrf.mxu2  ;;  %v674_v1 = vpop.f32.mrf.mxu3 }
  0xe5   : > { %v655_v2 = vadd.f32 %v654_v0, %v591_v61  ;;  %v675_v3 = vadd.f32 %v674_v1, %v591_v61 }
  0xe7   : > { %799 = vst [vmem:[%s1514_s21 + $0x10] sm:$0xff] %v655_v2 }
  0xe8   : > { %800 = vst [vmem:[%s1514_s21 + $0x18] sm:$0xff] %v675_v3  ;;  %v694_v4 = vpop.f32.mrf.mxu0  ;;  %v714_v5 = vpop.f32.mrf.mxu1 }
  0xe9   : > { %v695_v6 = vadd.f32 %v694_v4, %v591_v61  ;;  %v715_v7 = vadd.f32 %v714_v5, %v591_v61 }
  0xeb   : > { %801 = vst [vmem:[%s1514_s21 + $0x20] sm:$0xff] %v695_v6 }
  0xec   : > { %802 = vst [vmem:[%s1514_s21 + $0x28] sm:$0xff] %v715_v7 }
  0xf2   : > { %v734_v8 = vpop.f32.mrf.mxu2  ;;  %v754_v9 = vpop.f32.mrf.mxu3 }
  0xf3   : > { %v735_v10 = vadd.f32 %v734_v8, %v591_v61  ;;  %v755_v11 = vadd.f32 %v754_v9, %v591_v61 }
  0xf5   : > { %803 = vst [vmem:[%s1514_s21 + $0x30] sm:$0xff] %v735_v10 }
  0xf6   : > { %804 = vst [vmem:[%s1514_s21 + $0x38] sm:$0xff] %v755_v11 }
  0xf8   : > { %v774_v12 = vpop.f32.mrf.mxu0  ;;  %v794_v13 = vpop.f32.mrf.mxu1 }
  0xf9   : > { %v775_v14 = vadd.f32 %v774_v12, %v591_v61  ;;  %v795_v15 = vadd.f32 %v794_v13, %v591_v61 }
  0xfb   : > { %805 = vst [vmem:[%s1514_s21 + $0x40] sm:$0xff] %v775_v14 }
  0xfc   : > { %806 = vst [vmem:[%s1514_s21 + $0x48] sm:$0xff] %v795_v15 }
  0xfd   : > { %1109 = shalt.err (!%p1106_p0)
}
  0xfe   : > { %948 = dma.vmem_to_hbm [thread:$0]  (%p1311_p12), %s824_s19, 1280, %s826_s24, %s808_s28  }
  0xff PF: > { %p959_p1 = scmp.ge.s32.totalorder %s1204_s22, 2  ;;  %s837_s15 = sand.u32 1, %s1164_s12  }
 0x100   : > { %s838_s21 = scalar_lea.sflag [#allocation5], %s837_s15 }
 0x101   : > { %p955_p4 = pnand %p959_p1, %p1324_p2 }
 0x103   : > { %p956_p5 = pneg %p955_p4 }
 0x105   : > { %1159 = dma.done.wait (%p956_p5), %s838_s21, 1280  }
 0x106   : > { %1161 = vsyncadd (%p956_p5), %s838_s21, 4294966016  ;;  %s19_s22 = sadd.s32 1, %s1204_s22   ;;  %s1598_s7 = sld [smem:[#allocation13_spill]] }
 0x107   : > { %p16_p6 = scmp.ge.s32.totalorder %s19_s22, 6   ;;  %s1599_s18 = sld [smem:[#allocation9_spill]] }
 0x108   : > { %s1600_s19 = sld [smem:[#allocation10_spill]]  ;;  %s1603_s12 = smov %s1168_s13 }
 0x109   : > { %s1601_s20 = sld [smem:[#allocation11_spill]]  ;;  %s1604_s13 = smov %s1172_s14 }
 0x10a   : > { %s1602_s21 = sld [smem:[#allocation12_spill]]  ;;  %s1605_s14 = smov %s1319_s9 }
 0x10b   : > { %s1606_s15 = smov %s1180_s16  ;;  %s1607_s16 = smov %s1184_s17 }
 0x10c   : > { %s1608_s17 = smov %s1598_s7  ;;  %18 = sbr.rel (!%p16_p6) target bundleno = 9 (0x9), region = 81 }
 0x111   :  { %844 = vsyncpa [#allocation4], 1 }
 0x112   :  { %846 = vsyncpa [#allocation4 + $0x1], 1 }
 0x113   :  { %847 = vsyncpa [#allocation5], 1 }
 0x114   :  { %849 = vsyncpa [#allocation5 + $0x1], 1 }

</bundles_post_ra>
